<compile_context>
chip_gen: v6e
topology: v6e:2x2x1
jax: 0.10.0
libtpu: 0.0.40
codegen_flags: <defaults>
</compile_context>

<pallas_src>
import functools
import math

import numpy as np
import jax
import jax.numpy as jnp
from jax.experimental import pallas as pl
from jax.experimental.pallas import tpu as pltpu


def _sinusoidal_embedding_kernel(t_ref, f_ref, p_ref, o_ref):
    # t_ref: (TR, K)     f32  packed timesteps (K batch rows per lane row)
    # f_ref: (1, dim)    f32  concat(freqs, freqs)            (grid-resident)
    # p_ref: (1, K*dim)  f32  tile([0...0, pi/2...pi/2], K)   (grid-resident)
    # o_ref: (TR, K*dim)
    K = t_ref.shape[1]
    t = t_ref[...]
    if K == 1:
        emb = t * f_ref[...]                                    # (TR,1)*(1,dim)
    else:
        # Expand each of the K packed timesteps across its dim-wide lane slot.
        emb = jnp.concatenate(
            [t[:, k:k + 1] * f_ref[...] for k in range(K)], axis=-1
        )                                                       # (TR, K*dim)
    # Single full-width sin (cos folded in via the +pi/2 phase) and a single
    # unmasked, lane-dense store.
    o_ref[...] = jnp.sin(emb + p_ref[...]).astype(o_ref.dtype)


def _round_up(x: int, m: int) -> int:
    return (x + m - 1) // m * m


def _padded_block_bytes(rows: int, cols: int) -> int:
    # f32 VMEM block footprint with (8, 128) sublane/lane padding.
    return _round_up(max(rows, 1), 8) * _round_up(max(cols, 1), 128) * 4


_XLA_FALLBACK_ELEMS = 1 << 14  # below this, launch overhead dominates


@functools.partial(jax.jit, static_argnames=("dim", "force_pallas", "out_dtype"))
def sinusoidal_position_embeddings(time, dim, *, force_pallas=False,
                                   out_dtype=jnp.float32):
    """time: (B,) -> (B, dim) sinusoidal embeddings (PyTorch-compatible)."""
    assert dim % 2 == 0 and dim // 2 > 1, "dim must be even and > 2"
    B = time.shape[0]
    half_dim = dim // 2
    time_f32 = time.astype(jnp.float32)

    scale = math.log(10000.0) / (half_dim - 1)
    freqs = jnp.exp(jnp.arange(half_dim, dtype=jnp.float32) * (-scale))

    if (B * dim <= _XLA_FALLBACK_ELEMS) and not force_pallas:
        # Tiny payload (e.g. the module's B=8, dim=32 use): leave it to XLA /
        # fuse into the consumer instead of paying a standalone kernel launch.
        emb = time_f32[:, None] * freqs[None, :]
        return jnp.concatenate([jnp.sin(emb), jnp.cos(emb)], axis=-1).astype(out_dtype)

    # cos(x) = sin(x + pi/2): one full-width sin + one lane-dense store.
    f_full = jnp.concatenate([freqs, freqs]).reshape(1, dim)
    phase_row = jnp.concatenate([
        jnp.zeros((half_dim,), jnp.float32),
        jnp.full((half_dim,), math.pi / 2, jnp.float32),
    ])

    # Pack K batch rows per lane row when dim is a sub-multiple of the 128-lane
    # vreg width (dim=32 -> K=4 -> 100% lane utilization).
    K = 128 // dim if (dim < 128 and 128 % dim == 0) else 1
    L = K * dim
    phase = jnp.tile(phase_row, (K,)).reshape(1, L)

    # Row tiling of the packed (R_total, L) problem.
    R_raw = -(-B // K)                        # packed rows actually needed
    R8 = _round_up(max(R_raw, 8), 8)          # minimum legal (sublane) rows

    TR = 256
    # Keep round-up waste under ~12.5% of the real rows (fixes the old
    # pad-to-TB policy that could do ~2x wasted work).
    while TR > 8 and (_round_up(R8, TR) - R8) * 8 > R8:
        TR //= 2
    # VMEM: double-buffered out + time blocks with (8,128) padding must stay
    # well inside the smallest scoped-VMEM default (v5e 16 MiB; v7x 32 MiB).
    # The resident f_full/phase constants are ~1 vreg each.
    while TR > 8 and 2 * (_padded_block_bytes(TR, L) + _padded_block_bytes(TR, K)) > (8 << 20):
        TR //= 2
    # v7x megacore: give the "parallel" axis >= 2 tiles when there's enough work.
    if R8 >= 16 and _round_up(R8, TR) // TR < 2:
        TR = max(8, TR // 2)

    R_total = _round_up(R8, TR)
    B_pad = R_total * K
    grid = (R_total // TR,)

    t_pad = time_f32
    if B_pad != B:
        t_pad = jnp.pad(t_pad, (0, B_pad - B))
    t2d = t_pad.reshape(R_total, K)

    out_itemsize = np.dtype(out_dtype).itemsize

    out_packed = pl.pallas_call(
        _sinusoidal_embedding_kernel,
        out_shape=jax.ShapeDtypeStruct((R_total, L), out_dtype),
        grid=grid,
        in_specs=[
            pl.BlockSpec((TR, K), lambda i: (i, 0)),    # packed timesteps
            pl.BlockSpec((1, dim), lambda i: (0, 0)),   # resident concat(freqs,freqs)
            pl.BlockSpec((1, L), lambda i: (0, 0)),     # resident phase (sin->cos)
        ],
        out_specs=pl.BlockSpec((TR, L), lambda i: (i, 0)),
        compiler_params=pltpu.CompilerParams(
            dimension_semantics=("parallel",),          # shard tiles across v7x TCs
        ),
        cost_estimate=pl.CostEstimate(
            flops=2 * R_total * L,
            transcendentals=R_total * L,                # advisory; sin = VPU polynomial
            bytes_accessed=4 * (R_total * K + dim + L) + out_itemsize * R_total * L,
        ),
    )(t2d, f_full, phase)

    out = out_packed.reshape(B_pad, dim)
    return out[:B] if B_pad != B else out


def _reference(time: jax.Array, dim: int) -> jax.Array:
    half_dim = dim // 2
    scale = math.log(10000.0) / (half_dim - 1)
    freqs = jnp.exp(jnp.arange(half_dim, dtype=jnp.float32) * -scale)
    emb = time.astype(jnp.float32)[:, None] * freqs[None, :]
    return jnp.concatenate([jnp.sin(emb), jnp.cos(emb)], axis=-1)


if __name__ == "__main__":
    root = jax.random.PRNGKey(0)
    k1, k2, k3 = jax.random.split(root, 3)

    def check(out, ref, name):
        assert out.shape == ref.shape, (name, out.shape, ref.shape)
        # |emb| reaches ~1e3; sin/cos argument reduction differs between the
        # Mosaic VPU path, the Pallas CPU interpreter and XLA:TPU by up to
        # O(|x| * eps_f32) absolute. Real layout / indexing bugs show up as
        # O(1) errors, so this tolerance still catches them.
        assert jnp.allclose(out.astype(jnp.float32), ref, atol=5e-3, rtol=1e-3), \
            f"mismatch vs reference: {name}"

    # 1) The module's implied usage (diffusion timesteps): B=8, dim=32.
    #    force_pallas=True so the Pallas path (K=4 lane packing) is exercised.
    B, dim = 8, 32
    t = jax.random.uniform(k1, (B,), jnp.float32, 0.0, 1000.0)
    out = jax.block_until_ready(
        sinusoidal_position_embeddings(t, dim=dim, force_pallas=True))
    check(out, _reference(t, dim), "B=8,dim=32 (pallas, K=4)")

    # 2) Non-multiple batch + dim=64: K=2 packing, padding path, 2-tile grid.
    B2, dim2 = 50, 64
    t2 = jax.random.uniform(k2, (B2,), jnp.float32, 0.0, 1000.0)
    out2 = jax.block_until_ready(
        sinusoidal_position_embeddings(t2, dim=dim2, force_pallas=True))
    check(out2, _reference(t2, dim2), "B=50,dim=64 (pallas, K=2)")

    # 3) dim >= 128 path (K=1, no packing), multi-tile grid.
    B3, dim3 = 24, 256
    t3 = jax.random.uniform(k3, (B3,), jnp.float32, 0.0, 1000.0)
    out3 = jax.block_until_ready(
        sinusoidal_position_embeddings(t3, dim=dim3, force_pallas=True))
    check(out3, _reference(t3, dim3), "B=24,dim=256 (pallas, K=1)")

    # 4) Default entry point at the tiny model size -> plain-XLA fallback path.
    out4 = jax.block_until_ready(sinusoidal_position_embeddings(t, dim=dim))
    check(out4, _reference(t, dim), "B=8,dim=32 (xla fallback)")

    print("KERNEL_OK")
</pallas_src>

<mosaic_0001>
module attributes {stable_mosaic.version = 11 : i64} {
  func.func @_sinusoidal_embedding_kernel(%arg0: i32, %arg1: memref<8x4xf32, #tpu.memory_space<vmem>>, %arg2: memref<1x32xf32, #tpu.memory_space<vmem>>, %arg3: memref<1x128xf32, #tpu.memory_space<vmem>>, %arg4: memref<8x128xf32, #tpu.memory_space<vmem>>) attributes {dimension_semantics = [#tpu.dimension_semantics<parallel>], iteration_bounds = array<i64: 1>, scalar_prefetch = 0 : i64, scratch_operands = 0 : i64, tpu.core_type = #tpu.core_type<tc>, window_params = [{transform_indices = @transform_0, window_bounds = array<i64: 8, 4>}, {pipeline_mode = #tpu.pipeline_mode<synchronous>, transform_indices = @transform_1, window_bounds = array<i64: 1, 32>}, {pipeline_mode = #tpu.pipeline_mode<synchronous>, transform_indices = @transform_2, window_bounds = array<i64: 1, 128>}, {transform_indices = @transform_3, window_bounds = array<i64: 8, 128>}]} {
    %c0 = arith.constant 0 : index
    %c0_0 = arith.constant 0 : index
    %0 = vector.load %arg1[%c0, %c0_0] : memref<8x4xf32, #tpu.memory_space<vmem>>, vector<8x4xf32>
    %1 = vector.extract_strided_slice %0 {offsets = [0, 0], sizes = [8, 1], strides = [1, 1]} : vector<8x4xf32> to vector<8x1xf32>
    %c0_1 = arith.constant 0 : index
    %c0_2 = arith.constant 0 : index
    %2 = vector.load %arg2[%c0_1, %c0_2] : memref<1x32xf32, #tpu.memory_space<vmem>>, vector<1x32xf32>
    %3 = vector.broadcast %1 : vector<8x1xf32> to vector<8x32xf32>
    %4 = vector.broadcast %2 : vector<1x32xf32> to vector<8x32xf32>
    %5 = arith.mulf %3, %4 : vector<8x32xf32>
    %6 = vector.extract_strided_slice %0 {offsets = [0, 1], sizes = [8, 1], strides = [1, 1]} : vector<8x4xf32> to vector<8x1xf32>
    %c0_3 = arith.constant 0 : index
    %c0_4 = arith.constant 0 : index
    %7 = vector.load %arg2[%c0_3, %c0_4] : memref<1x32xf32, #tpu.memory_space<vmem>>, vector<1x32xf32>
    %8 = vector.broadcast %6 : vector<8x1xf32> to vector<8x32xf32>
    %9 = vector.broadcast %7 : vector<1x32xf32> to vector<8x32xf32>
    %10 = arith.mulf %8, %9 : vector<8x32xf32>
    %11 = vector.extract_strided_slice %0 {offsets = [0, 2], sizes = [8, 1], strides = [1, 1]} : vector<8x4xf32> to vector<8x1xf32>
    %c0_5 = arith.constant 0 : index
    %c0_6 = arith.constant 0 : index
    %12 = vector.load %arg2[%c0_5, %c0_6] : memref<1x32xf32, #tpu.memory_space<vmem>>, vector<1x32xf32>
    %13 = vector.broadcast %11 : vector<8x1xf32> to vector<8x32xf32>
    %14 = vector.broadcast %12 : vector<1x32xf32> to vector<8x32xf32>
    %15 = arith.mulf %13, %14 : vector<8x32xf32>
    %16 = vector.extract_strided_slice %0 {offsets = [0, 3], sizes = [8, 1], strides = [1, 1]} : vector<8x4xf32> to vector<8x1xf32>
    %c0_7 = arith.constant 0 : index
    %c0_8 = arith.constant 0 : index
    %17 = vector.load %arg2[%c0_7, %c0_8] : memref<1x32xf32, #tpu.memory_space<vmem>>, vector<1x32xf32>
    %18 = vector.broadcast %16 : vector<8x1xf32> to vector<8x32xf32>
    %19 = vector.broadcast %17 : vector<1x32xf32> to vector<8x32xf32>
    %20 = arith.mulf %18, %19 : vector<8x32xf32>
    %21 = tpu.concatenate %5, %10, %15, %20 in 1 : vector<8x32xf32>, vector<8x32xf32>, vector<8x32xf32>, vector<8x32xf32> -> vector<8x128xf32>
    %c0_9 = arith.constant 0 : index
    %c0_10 = arith.constant 0 : index
    %22 = vector.load %arg3[%c0_9, %c0_10] : memref<1x128xf32, #tpu.memory_space<vmem>>, vector<1x128xf32>
    %23 = vector.broadcast %22 : vector<1x128xf32> to vector<8x128xf32>
    %24 = arith.addf %21, %23 : vector<8x128xf32>
    %25 = math.sin %24 : vector<8x128xf32>
    %c0_11 = arith.constant 0 : index
    %c0_12 = arith.constant 0 : index
    %26 = vector.load %arg4[%c0_11, %c0_12] : memref<8x128xf32, #tpu.memory_space<vmem>>, vector<8x128xf32>
    tpu.vector_store %arg4[%c0_11, %c0_12], %25 {strides = array<i32>} : memref<8x128xf32, #tpu.memory_space<vmem>>, vector<8x128xf32>,
    return
  }
  func.func @transform_0(%arg0: i32) -> (i32, i32) {
    %c0_i32 = arith.constant 0 : i32
    %c0_i32_0 = arith.constant 0 : i32
    return %arg0, %c0_i32 : i32, i32
  }
  func.func @transform_1(%arg0: i32) -> (i32, i32) {
    %c0_i32 = arith.constant 0 : i32
    %c0_i32_0 = arith.constant 0 : i32
    %c0_i32_1 = arith.constant 0 : i32
    return %c0_i32, %c0_i32_0 : i32, i32
  }
  func.func @transform_2(%arg0: i32) -> (i32, i32) {
    %c0_i32 = arith.constant 0 : i32
    %c0_i32_0 = arith.constant 0 : i32
    %c0_i32_1 = arith.constant 0 : i32
    return %c0_i32, %c0_i32_0 : i32, i32
  }
  func.func @transform_3(%arg0: i32) -> (i32, i32) {
    %c0_i32 = arith.constant 0 : i32
    %c0_i32_0 = arith.constant 0 : i32
    return %arg0, %c0_i32 : i32, i32
  }
}

</mosaic_0001>

<bundles_post_ra>
// kernel: tile.6
= control target key start
LH: loop header
LB: loop body
LE: loop exit
PB: predicated region body
PF: predicated region fallthrough
CT: control target
= control target key end

     0   :  { %s22_s0 = inlined_call_operand.vmem [shape: f32[32], index: 0, kind: input, shape index: {}]   ;;  %s23_s1 = inlined_call_operand.vmem [shape: f32[4,32], index: 1, kind: output, shape index: {}]  }
   0x1   :  { %v4_v0 = vld [vmem:[%s22_s0] ss:$0 sm:$0xff] }
   0x2   :  { %5 = vst [vmem:[%s23_s1] sm:$0xf] %v4_v0 }

// kernel: tile.7
= control target key start
LH: loop header
LB: loop body
LE: loop exit
PB: predicated region body
PF: predicated region fallthrough
CT: control target
= control target key end

     0   :  { %vm8_vm0 = vcmask 261120   ;;  %s40_s8 = smov 32   ;;  %s41_s9 = smov 64   ;;  %vm14_vm1 = vcmask 1048320   ;;  %vm20_vm2 = vcmask 785920   ;;  %vm26_vm3 = vcmask 523520   ;;  %s58_s0 = inlined_call_operand.vmem [shape: f32[4,32], index: 0, kind: input, shape index: {}]   ;;  %s59_s1 = inlined_call_operand.vmem [shape: f32[1,128], index: 1, kind: output, shape index: {}]  }
   0x1   :  { %v5_v0 = vld [vmem:[%s58_s0] sm:$0xf]  ;;  %s39_s0 = smov 96  }
   0x2   :  { %6 = vst [vmem:[#allocation1] sm:$0xf] %v5_v0 }
   0x9   :  { %v11_v1 = vld [vmem:[#allocation1 + $0x3] sm:$0x1]   ;;  %v23_v2 = vld [vmem:[#allocation1 + $0x1] sm:$0x1]   ;;  %v7_v3 = vld [vmem:[#allocation1] sm:$0x1]  }
   0xa   :  { %12 = vrot.lane.b32.xlu0 %v11_v1, %s39_s0  ;;  %24 = vrot.lane.b32.xlu1 %v23_v2, %s40_s8  ;;  %v17_v4 = vld [vmem:[#allocation1 + $0x2] sm:$0x1]   ;;  %9 = vst.msk [vmem:[#allocation0] sm:$0x1] %vm8_vm0, %v7_v3  }
   0xe   :  { %18 = vrot.lane.b32.xlu0 %v17_v4, %s41_s9 }
  0x7c   :  { %v13_v5 = vpop.permute.xlu0 %12   ;;  %v25_v6 = vpop.permute.xlu1 %24  }
  0x7d   :  { %15 = vst.msk [vmem:[#allocation0] sm:$0x1] %vm14_vm1, %v13_v5  }
  0x80   :  { %v19_v7 = vpop.permute.xlu0 %18  }
  0x81   :  { %21 = vst.msk [vmem:[#allocation0] sm:$0x1] %vm20_vm2, %v19_v7  }
  0x82   :  { %27 = vst.msk [vmem:[#allocation0] sm:$0x1] %vm26_vm3, %v25_v6  }
  0x89   :  { %v32_v8 = vld [vmem:[#allocation0] sm:$0x1] }
  0x8a   :  { %35 = vst [vmem:[%s59_s1] sm:$0x1] %v32_v8 }

// kernel: sinusoidal_position_embeddings.1
= control target key start
LH: loop header
LB: loop body
LE: loop exit
PB: predicated region body
PF: predicated region fallthrough
CT: control target
= control target key end

     0   :  { %v210_v0 = vmov 1   ;;  %v211_v2 = vmov 3   ;;  %v212_v3 = vmov 2   ;;  %v213_v4 = vmov 0   ;;  %s214_s16 = smov 32   ;;  %s216_s17 = smov 64   ;;  %s276_s0 = inlined_call_operand.vmem [shape: f32[8,4], index: 0, kind: input, shape index: {}]   ;;  %s277_s1 = inlined_call_operand.vmem [shape: f32[1,32], index: 1, kind: input, shape index: {}]   ;;  %s278_s2 = inlined_call_operand.vmem [shape: f32[1,128], index: 2, kind: input, shape index: {}]   ;;  %s279_s3 = inlined_call_operand.vmem [shape: f32[8,128], index: 3, kind: output, shape index: {}]  }
   0x1   :  { %201 = vset.pattern.permute.xlu0 %v210_v0  ;;  %v14_v1 = vld [vmem:[%s276_s0] sm:$0xff]  ;;  %203 = vset.pattern.permute.xlu1 %v211_v2  ;;  %s215_s0 = smov 96   ;;  %vm55_vm0 = vcmask 261120   ;;  %vm57_vm1 = vcmask 523264   ;;  %vm59_vm2 = vcmask 785408  }
   0x2   :  { %29 = vperm.xlu0 %201, %v14_v1   ;;  %39 = vperm.xlu1 %203, %v14_v1   ;;  %v178_v5 = vld [vmem:[%s277_s1] ss:$0 sm:$0xff]  ;;  %v217_v32 = vmov 683565275   ;;  %v218_v34 = vmov 2475754826  }
   0x3   :  { %v179_v18 = vld [vmem:[%s278_s2] ss:$0 sm:$0xff]  ;;  %v219_v37 = vmov 2131351028   ;;  %v220_v40 = vmov 2102212464  }
   0x4   :  { %v221_v43 = vmov 920167782   ;;  %v222_v46 = vmov 1326507024  }
   0x6   :  { %202 = vset.pattern.permute.xlu0 %v212_v3  ;;  %204 = vset.pattern.permute.xlu1 %v213_v4 }
   0x7   :  { %34 = vperm.xlu0 %202, %v14_v1   ;;  %18 = vperm.xlu1 %204, %v14_v1  }
   0xb   :  { %205 = vset.pattern.permute.xlu0 %v211_v2 }
  0x7d   :  { %v30_v6 = vpop.permute.xlu0 %29  ;;  %v40_v7 = vpop.permute.xlu1 %39 }
  0x7e   :  { %v32_v8 = vmul.f32 %v178_v5, %v30_v6  ;;  %v42_v9 = vmul.f32 %v178_v5, %v40_v7 }
  0x80   :  { %44 = vrot.lane.b32.xlu1 %v32_v8, %s214_s16 }
  0x82   :  { %v35_v10 = vpop.permute.xlu0 %34  ;;  %v19_v12 = vpop.permute.xlu1 %18 }
  0x83   :  { %v37_v11 = vmul.f32 %v178_v5, %v35_v10  ;;  %v27_v14 = vmul.f32 %v178_v5, %v19_v12 }
  0x84   :  { %52 = vrot.lane.b32.xlu1 %v42_v9, %s215_s0 }
  0x85   :  { %48 = vrot.lane.b32.xlu0 %v37_v11, %s216_s17 }
  0xf2   :  { %v45_v13 = vpop.permute.xlu1 %44 }
  0xf3   :  { %v56_v16 = vsel %vm55_vm0, %v27_v14, %v45_v13 }
  0xf6   :  { %v53_v15 = vpop.permute.xlu1 %52 }
  0xf7   :  { %v49_v17 = vpop.permute.xlu0 %48 }
  0xf8   :  { %v58_v19 = vsel %vm57_vm1, %v56_v16, %v49_v17 }
  0xf9   :  { %v60_v20 = vsel %vm59_vm2, %v58_v19, %v53_v15 }
  0xfa   :  { %v252_v21 = vadd.f32 %v179_v18, %v60_v20 }
  0xfc   :  { %v72_v22 = vand.u32 2139095040, %v252_v21  ;;  %v69_v26 = vand.u32 2147483647, %v252_v21  ;;  %vm71_vm10 = vcmp.lt.s32.totalorder %v252_v21, 0  ;;  %vm161_vm15 = vweird.f32 %v252_v21 }
  0xfe   :  { %v73_v23 = vshrl.u32 %v72_v22, 23  ;;  %v76_v29 = vand.u32 8388607, %v69_v26  ;;  %vm70_vm11 = vcmp.le.f32.partialorder %v69_v26, 0.7853982 }
 0x100   :  { %v180_v24 = vadd.s32 4294967169, %v73_v23  ;;  %v77_v48 = vor.u32 8388608, %v76_v29 }
 0x102   :  { %v79_v25 = vadd.s32 1, %v180_v24  ;;  %v117_v62 = vshll.u32 %v77_v48, 8 }
 0x104   :  { %vm80_vm3 = vcmp.gt.s32.totalorder %v79_v25, 0 }
 0x105   :  { %v81_v27 = vsel %vm80_vm3, %v79_v25, 0 }
 0x106   :  { %v83_v28 = vand.u32 31, %v81_v27  ;;  %v82_v31 = vshrl.u32 %v81_v27, 5 }
 0x108   :  { %v84_v30 = vsub.s32 32, %v83_v28  ;;  %v86_v33 = vshll.u32 %v217_v32, %v83_v28  ;;  %v89_v35 = vshll.u32 %v218_v34, %v83_v28  ;;  %v92_v39 = vshll.u32 %v219_v37, %v83_v28 }
 0x109   :  { %v95_v42 = vshll.u32 %v220_v40, %v83_v28  ;;  %v98_v45 = vshll.u32 %v221_v43, %v83_v28  ;;  %vm101_vm4 = vcmp.lt.s32.totalorder %v82_v31, 1  ;;  %vm104_vm5 = vcmp.lt.s32.totalorder %v82_v31, 4 }
 0x10a   :  { %v87_v36 = vshrl.u32 %v218_v34, %v84_v30  ;;  %v90_v38 = vshrl.u32 %v219_v37, %v84_v30  ;;  %v93_v41 = vshrl.u32 %v220_v40, %v84_v30  ;;  %v96_v44 = vshrl.u32 %v221_v43, %v84_v30 }
 0x10b   :  { %v99_v47 = vshrl.u32 %v222_v46, %v84_v30  ;;  %v85_v57 = vshrl.u32 %v217_v32, %v84_v30  ;;  %vm103_vm6 = vcmp.lt.s32.totalorder %v82_v31, 3  ;;  %vm102_vm7 = vcmp.lt.s32.totalorder %v82_v31, 2 }
 0x10c   :  { %v88_v49 = vor.u32 %v87_v36, %v86_v33  ;;  %v91_v50 = vor.u32 %v90_v38, %v89_v35  ;;  %v94_v51 = vor.u32 %v93_v41, %v92_v39  ;;  %v97_v52 = vor.u32 %v96_v44, %v95_v42 }
 0x10d   :  { %v100_v53 = vor.u32 %v99_v47, %v98_v45 }
 0x10e   :  { %v106_v54 = vsel %vm104_vm5, %v94_v51, 2102212464  ;;  %v109_v55 = vsel %vm101_vm4, %v88_v49, %v91_v50  ;;  %v113_v56 = vsel %vm101_vm4, %v91_v50, %v94_v51  ;;  %v110_v58 = vsel %vm104_vm5, %v97_v52, 920167782 }
 0x10f   :  { %v114_v59 = vsel %vm104_vm5, %v100_v53, 1326507024  ;;  %v111_v60 = vsel %vm103_vm6, %v94_v51, %v110_v58  ;;  %v105_v63 = vsel %vm101_vm4, %v85_v57, %v88_v49  ;;  %v107_v0 = vsel %vm103_vm6, %v91_v50, %v106_v54 }
 0x110   :  { %v115_v61 = vsel %vm103_vm6, %v97_v52, %v114_v59  ;;  %v112_v1 = vsel %vm102_vm7, %v109_v55, %v111_v60  ;;  %v108_v7 = vsel %vm102_vm7, %v105_v63, %v107_v0 }
 0x111   :  { %v116_v2 = vsel %vm102_vm7, %v113_v56, %v115_v61  ;;  %v261_v5 = vmul.u32.u64.low %v117_v62, %v112_v1  ;;  %v262_v6 = vmul.u32.u64.high %v117_v62, %v112_v1, %v261_v5  ;;  %v124_v9 = vmul.u32 %v117_v62, %v108_v7 }
 0x112   :  { %v258_v3 = vmul.u32.u64.low %v117_v62, %v116_v2  ;;  %v259_v4 = vmul.u32.u64.high %v117_v62, %v116_v2, %v258_v3 }
 0x113   :  { %v127_v8 = vadd.s32 1, %v262_v6 }
 0x114   :  { %vm126_vm8 = vc.u32 %v259_v4, %v261_v5  ;;  %v125_v22 = vadd.s32 %v261_v5, %v259_v4 }
 0x115   :  { %v128_v10 = vsel %vm126_vm8, %v127_v8, %v262_v6 }
 0x116   :  { %v129_v11 = vadd.s32 %v128_v10, %v124_v9 }
 0x118   :  { %v130_v12 = vadd.s32 536870912, %v129_v11 }
 0x11a   :  { %v131_v13 = vshrl.u32 %v130_v12, 30 }
 0x11c   :  { %v132_v14 = vshll.u32 %v131_v13, 30  ;;  %v155_v36 = vsub.s32 4, %v131_v13 }
 0x11e   :  { %v133_v15 = vsub.s32 %v129_v11, %v132_v14  ;;  %v156_v39 = vsel %vm71_vm10, %v155_v36, %v131_v13 }
 0x11f   :  { %v158_v40 = vsel %vm70_vm11, 0, %v156_v39 }
 0x120   :  { %v135_v16 = vsub.s32 0, %v133_v15  ;;  %v162_v41 = vadd.s32 3, %v158_v40 }
 0x122   :  { %v181_v17 = vmin.u32 %v135_v16, %v133_v15  ;;  %v163_v42 = vand.u32 3, %v162_v41 }
 0x124   :  { %v137_v18 = vclz %v181_v17  ;;  %vm168_vm12 = vcmp.eq.s32.totalorder %v163_v42, 2  ;;  %vm165_vm13 = vcmp.eq.s32.totalorder %v163_v42, 0  ;;  %vm164_vm14 = vcmp.lt.s32.totalorder %v163_v42, 2 }
 0x126   :  { %v182_v19 = vadd.s32 4294967294, %v137_v18 }
 0x128   :  { %vm183_vm9 = vcmp.lt.s32.totalorder %v182_v19, 0 }
 0x129   :  { %v140_v20 = vsel %vm183_vm9, 0, %v182_v19 }
 0x12a   :  { %v141_v23 = vsub.s32 32, %v140_v20  ;;  %v145_v24 = vsub.s32 4294967266, %v140_v20  ;;  %v142_v25 = vshll.u32 %v133_v15, %v140_v20 }
 0x12c   :  { %v143_v27 = vshrl.u32 %v125_v22, %v141_v23  ;;  %v146_v28 = vadd.s32 127, %v145_v24 }
 0x12e   :  { %v144_v29 = vor.u32 %v143_v27, %v142_v25  ;;  %v147_v30 = vshll.u32 %v146_v28, 23 }
 0x130   :  { %v148_v31 = vor.u32 4788187, %v147_v30  ;;  %v151_v33 = vcvt.s32.f32 %v144_v29 }
 0x132   :  { %v149_v32 = vand.u32 2147483647, %v148_v31 }
 0x134   :  { %v152_v34 = vmul.f32 %v151_v33, %v149_v32 }
 0x136   :  { %v153_v35 = vxor.u32 2147483648, %v152_v34 }
 0x138   :  { %v154_v37 = vsel %vm71_vm10, %v153_v35, %v152_v34 }
 0x139   :  { %v157_v38 = vsel %vm70_vm11, %v252_v21, %v154_v37 }
 0x13a   :  { %206 = vcosq.f32 %v157_v38 }
 0x13b   :  { %208 = vsinq.f32 %v157_v38 }
 0x147   :  { %v207_v43 = vpop.eup %206 }
 0x148   :  { %v209_v44 = vpop.eup %208  ;;  %v169_v45 = vxor.u32 2147483648, %v207_v43 }
 0x149   :  { %v166_v46 = vxor.u32 2147483648, %v209_v44 }
 0x14a   :  { %v170_v47 = vsel %vm168_vm12, %v169_v45, %v209_v44 }
 0x14b   :  { %v167_v48 = vsel %vm165_vm13, %v207_v43, %v166_v46 }
 0x14c   :  { %v171_v26 = vsel %vm164_vm14, %v167_v48, %v170_v47 }
 0x14d   :  { %v172_v49 = vsel %vm161_vm15, nan, %v171_v26 }
 0x14e   :  { %173 = vst [vmem:[%s279_s3] sm:$0xff] %v172_v49 }

</bundles_post_ra>
